<compile_context>
chip_gen: v6e
topology: v6e:2x2x1
jax: 0.10.0
libtpu: 0.0.40
codegen_flags: <defaults>
</compile_context>

<pallas_src>
import functools

import jax
import jax.numpy as jnp
from jax import lax
from jax.experimental import pallas as pl
from jax.experimental.pallas import tpu as pltpu


# ----------------------------------------------------------------------------
# Shared epilogue: Mish with a single exp + divide.
#   mish(y) = y * tanh(softplus(y)),  softplus threshold = 20 (PyTorch).
#   tanh(log(u)) = (u^2 - 1) / (u^2 + 1) with u = 1 + exp(y).
# ----------------------------------------------------------------------------
def _mish(y):
    t = jnp.exp(jnp.minimum(y, 20.0))      # clamp: for y>20 the ratio is 1.0 in f32
    u = 1.0 + t
    u2 = u * u
    return y * ((u2 - 1.0) / (u2 + 1.0))


# ----------------------------------------------------------------------------
# Main kernel (stride == 1): direct conv via k*k shifted flat-spatial matmuls.
# ----------------------------------------------------------------------------
def _direct_conv_bn_mish_kernel(x_ref, w_ref, b_ref, o_ref, *, k, wp):
    # x_ref: (C_in, Lin)          flattened zero-padded image (one batch element)
    # w_ref: (k*k, C_out, C_in)   conv weight with BN scale folded in
    # b_ref: (C_out, 1)           folded BN bias (broadcast over lanes)
    # o_ref: (C_out, Lc)          Lc = H_out * Wp; junk right-pad cols sliced later
    lc = o_ref.shape[-1]
    acc = jnp.zeros(o_ref.shape, jnp.float32)
    for kh in range(k):
        for kw in range(k):
            off = kh * wp + kw                     # static shift into the flat image
            acc = acc + jnp.dot(
                w_ref[kh * k + kw],                # (C_out, C_in)
                x_ref[:, off:off + lc],            # (C_in, Lc) static slice
                preferred_element_type=jnp.float32)
    y = acc + b_ref[...]
    o_ref[...] = _mish(y).astype(o_ref.dtype)


# ----------------------------------------------------------------------------
# Fallback kernel (stride > 1): fused im2col-GEMM + bias + Mish.
# ----------------------------------------------------------------------------
def _gemm_bn_mish_kernel(p_ref, w_ref, b_ref, o_ref):
    # p_ref: (tm, K); w_ref: (K, C_pad); b_ref: (1, C_pad); o_ref: (tm, C_pad)
    y = jnp.dot(p_ref[...], w_ref[...],
                preferred_element_type=jnp.float32) + b_ref[...]
    o_ref[...] = _mish(y).astype(o_ref.dtype)


def _im2col(x, kernel_size, stride, pad):
    """x: (N, C, H, W) -> patches (N*H_out*W_out, C*k*k), plus (N, H_out, W_out)."""
    n, c, h, w = x.shape
    k = kernel_size
    h_out = (h + 2 * pad - k) // stride + 1
    w_out = (w + 2 * pad - k) // stride + 1
    xp = jnp.pad(x, ((0, 0), (0, 0), (pad, pad), (pad, pad)))
    cols = []
    for kh in range(k):
        for kw in range(k):
            cols.append(
                xp[:, :, kh:kh + stride * h_out:stride, kw:kw + stride * w_out:stride]
            )
    patches = jnp.stack(cols, axis=2)  # (N, C, k*k, H_out, W_out), order = (C, kh, kw)
    patches = patches.transpose(0, 3, 4, 1, 2).reshape(n * h_out * w_out, c * k * k)
    return patches, (n, h_out, w_out)


@functools.partial(jax.jit, static_argnames=("kernel_size", "stride"))
def conv_bn_activation(x, weight, bn_gamma, bn_beta, bn_mean, bn_var,
                       *, kernel_size, stride):
    """Conv2d(bias=False) + BatchNorm2d(eval) + Mish.

    x:      (N, C_in, H, W)       float32, NCHW (PyTorch convention)
    weight: (C_out, C_in, k, k)   PyTorch conv weight layout
    returns (N, C_out, H_out, W_out)
    """
    eps = 1e-5
    k = kernel_size
    pad = (k - 1) // 2
    n, c_in, h, w = x.shape
    c_out = weight.shape[0]

    # ---- BN folding (plain JAX): scale into the weight, bias kept separate ----
    scale = bn_gamma / jnp.sqrt(bn_var + eps)                 # (C_out,)
    bias = bn_beta - bn_mean * scale                          # (C_out,)
    w_folded = weight * scale[:, None, None, None]            # (C_out, C_in, k, k)

    if stride == 1:
        # ------------------- direct in-kernel im2col path --------------------
        hp, wp = h + 2 * pad, w + 2 * pad
        h_out, w_out = hp - k + 1, wp - k + 1
        lc = h_out * wp            # compute the full padded width; slice junk later
        lin = hp * wp + (k - 1)    # guard elements so the largest shift stays in-bounds

        xp = jnp.pad(x, ((0, 0), (0, 0), (pad, pad), (pad, pad)))
        x_flat = xp.reshape(n, c_in, hp * wp)
        if k > 1:
            x_flat = jnp.pad(x_flat, ((0, 0), (0, 0), (0, k - 1)))
        w_kk = w_folded.transpose(2, 3, 0, 1).reshape(k * k, c_out, c_in)
        b_col = bias.reshape(c_out, 1)

        out_flat = pl.pallas_call(
            functools.partial(_direct_conv_bn_mish_kernel, k=k, wp=wp),
            out_shape=jax.ShapeDtypeStruct((n, c_out, lc), jnp.float32),
            grid_spec=pltpu.PrefetchScalarGridSpec(
                num_scalar_prefetch=0,
                grid=(n,),                                      # one image per step
                in_specs=[
                    pl.BlockSpec((None, c_in, lin), lambda i: (i, 0, 0)),  # image
                    pl.BlockSpec((k * k, c_out, c_in), lambda i: (0, 0, 0)),  # weights
                    pl.BlockSpec((c_out, 1), lambda i: (0, 0)),             # BN bias
                ],
                out_specs=pl.BlockSpec((None, c_out, lc), lambda i: (i, 0, 0)),
            ),
            compiler_params=pltpu.CompilerParams(
                dimension_semantics=("parallel",)),
        )(x_flat, w_kk, b_col)

        # (N, C_out, H_out*Wp) -> (N, C_out, H_out, Wp) -> drop padded columns.
        return out_flat.reshape(n, c_out, h_out, wp)[:, :, :, :w_out]

    # ---------------- stride > 1 fallback: im2col GEMM path ------------------
    patches, (n, h_out, w_out) = _im2col(x, k, stride, pad)
    m, kk_dim = patches.shape
    w_mat = w_folded.reshape(c_out, c_in * k * k).T            # (K, C_out)

    c_pad = pl.cdiv(c_out, 128) * 128                          # lane-dense output
    w_mat = jnp.pad(w_mat, ((0, 0), (0, c_pad - c_out)))
    b_row = jnp.pad(bias.reshape(1, c_out), ((0, 0), (0, c_pad - c_out)))

    tm = min(512, pl.cdiv(m, 8) * 8)                           # large M tile
    m_pad = pl.cdiv(m, tm) * tm
    if m_pad != m:
        patches = jnp.pad(patches, ((0, m_pad - m), (0, 0)))

    out_flat = pl.pallas_call(
        _gemm_bn_mish_kernel,
        out_shape=jax.ShapeDtypeStruct((m_pad, c_pad), jnp.float32),
        grid_spec=pltpu.PrefetchScalarGridSpec(
            num_scalar_prefetch=0,
            grid=(m_pad // tm,),
            in_specs=[
                pl.BlockSpec((tm, kk_dim), lambda i: (i, 0)),
                pl.BlockSpec((kk_dim, c_pad), lambda i: (0, 0)),
                pl.BlockSpec((1, c_pad), lambda i: (0, 0)),
            ],
            out_specs=pl.BlockSpec((tm, c_pad), lambda i: (i, 0)),
        ),
        compiler_params=pltpu.CompilerParams(
            dimension_semantics=("parallel",)),
    )(patches, w_mat, b_row)

    out_flat = out_flat[:m, :c_out]
    return out_flat.reshape(n, h_out, w_out, c_out).transpose(0, 3, 1, 2)


def _reference(x, weight, bn_gamma, bn_beta, bn_mean, bn_var,
               *, kernel_size, stride):
    eps = 1e-5
    pad = (kernel_size - 1) // 2
    y = lax.conv_general_dilated(
        x, weight, window_strides=(stride, stride),
        padding=[(pad, pad), (pad, pad)],
        dimension_numbers=("NCHW", "OIHW", "NCHW"))
    scale = (bn_gamma / jnp.sqrt(bn_var + eps))[None, :, None, None]
    shift = (bn_beta - bn_mean * bn_gamma / jnp.sqrt(bn_var + eps))[None, :, None, None]
    y = y * scale + shift
    sp = jnp.where(y > 20.0, y, jnp.log1p(jnp.exp(jnp.minimum(y, 20.0))))
    return y * jnp.tanh(sp)


if __name__ == "__main__":
    # Module config: in_channels=4, out_channels=32, kernel_size=3, stride=1,
    # activation='mish', bn=True, bias=False
    in_channels, out_channels, kernel_size, stride = 4, 32, 3, 1
    N, H, W = 2, 16, 16

    key = jax.random.PRNGKey(0)
    kx, kw, kg, kb, km, kv = jax.random.split(key, 6)

    x = jax.random.normal(kx, (N, in_channels, H, W), dtype=jnp.float32)
    weight = 0.1 * jax.random.normal(
        kw, (out_channels, in_channels, kernel_size, kernel_size), dtype=jnp.float32)
    bn_gamma = 1.0 + 0.1 * jax.random.normal(kg, (out_channels,), dtype=jnp.float32)
    bn_beta = 0.1 * jax.random.normal(kb, (out_channels,), dtype=jnp.float32)
    bn_mean = 0.1 * jax.random.normal(km, (out_channels,), dtype=jnp.float32)
    bn_var = jnp.abs(1.0 + 0.1 * jax.random.normal(kv, (out_channels,), dtype=jnp.float32))

    out = conv_bn_activation(x, weight, bn_gamma, bn_beta, bn_mean, bn_var,
                             kernel_size=kernel_size, stride=stride)
    out = jax.block_until_ready(out)

    ref = _reference(x, weight, bn_gamma, bn_beta, bn_mean, bn_var,
                     kernel_size=kernel_size, stride=stride)
    assert out.shape == (N, out_channels, H, W), out.shape
    assert jnp.allclose(out, ref, atol=2e-4, rtol=2e-4), "mismatch vs reference"

    print("KERNEL_OK")
</pallas_src>

<mosaic_0001>
module attributes {stable_mosaic.version = 11 : i64} {
  func.func @_direct_conv_bn_mish_kernel(%arg0: i32, %arg1: memref<1x4x326xf32, #tpu.memory_space<vmem>>, %arg2: memref<9x32x4xf32, #tpu.memory_space<vmem>>, %arg3: memref<32x1xf32, #tpu.memory_space<vmem>>, %arg4: memref<1x32x288xf32, #tpu.memory_space<vmem>>) attributes {dimension_semantics = [#tpu.dimension_semantics<parallel>], iteration_bounds = array<i64: 2>, scalar_prefetch = 0 : i64, scratch_operands = 0 : i64, tpu.core_type = #tpu.core_type<tc>, window_params = [{transform_indices = @transform_0, window_bounds = array<i64: 1, 4, 326>}, {pipeline_mode = #tpu.pipeline_mode<synchronous>, transform_indices = @transform_1, window_bounds = array<i64: 9, 32, 4>}, {pipeline_mode = #tpu.pipeline_mode<synchronous>, transform_indices = @transform_2, window_bounds = array<i64: 32, 1>}, {transform_indices = @transform_3, window_bounds = array<i64: 1, 32, 288>}]} {
    %cst = arith.constant 0.000000e+00 : f32
    %0 = vector.broadcast %cst : f32 to vector<32x288xf32>
    %c0 = arith.constant 0 : index
    %c0_0 = arith.constant 0 : index
    %c0_1 = arith.constant 0 : index
    %1 = vector.load %arg2[%c0, %c0_0, %c0_1] : memref<9x32x4xf32, #tpu.memory_space<vmem>>, vector<1x32x4xf32>
    %2 = vector.shape_cast %1 : vector<1x32x4xf32> to vector<32x4xf32>
    %c0_2 = arith.constant 0 : index
    %c0_3 = arith.constant 0 : index
    %c0_4 = arith.constant 0 : index
    %3 = vector.load %arg1[%c0_2, %c0_3, %c0_4] : memref<1x4x326xf32, #tpu.memory_space<vmem>>, vector<1x4x288xf32>
    %4 = vector.shape_cast %3 : vector<1x4x288xf32> to vector<4x288xf32>
    %cst_5 = arith.constant dense<0.000000e+00> : vector<32x288xf32>
    %5 = tpu.matmul %2, %4, %cst_5 {dimension_numbers = #tpu.dot_dimension_numbers<[1], [0], [0], [1], [0, 0, 1, 1], [], []>} : vector<32x4xf32>, vector<4x288xf32>, vector<32x288xf32> -> vector<32x288xf32>
    %6 = arith.addf %0, %5 : vector<32x288xf32>
    %c1 = arith.constant 1 : index
    %c0_6 = arith.constant 0 : index
    %c0_7 = arith.constant 0 : index
    %7 = vector.load %arg2[%c1, %c0_6, %c0_7] : memref<9x32x4xf32, #tpu.memory_space<vmem>>, vector<1x32x4xf32>
    %8 = vector.shape_cast %7 : vector<1x32x4xf32> to vector<32x4xf32>
    %c0_8 = arith.constant 0 : index
    %c0_9 = arith.constant 0 : index
    %c1_10 = arith.constant 1 : index
    %9 = vector.load %arg1[%c0_8, %c0_9, %c1_10] : memref<1x4x326xf32, #tpu.memory_space<vmem>>, vector<1x4x288xf32>
    %10 = vector.shape_cast %9 : vector<1x4x288xf32> to vector<4x288xf32>
    %cst_11 = arith.constant dense<0.000000e+00> : vector<32x288xf32>
    %11 = tpu.matmul %8, %10, %cst_11 {dimension_numbers = #tpu.dot_dimension_numbers<[1], [0], [0], [1], [0, 0, 1, 1], [], []>} : vector<32x4xf32>, vector<4x288xf32>, vector<32x288xf32> -> vector<32x288xf32>
    %12 = arith.addf %6, %11 : vector<32x288xf32>
    %c2 = arith.constant 2 : index
    %c0_12 = arith.constant 0 : index
    %c0_13 = arith.constant 0 : index
    %13 = vector.load %arg2[%c2, %c0_12, %c0_13] : memref<9x32x4xf32, #tpu.memory_space<vmem>>, vector<1x32x4xf32>
    %14 = vector.shape_cast %13 : vector<1x32x4xf32> to vector<32x4xf32>
    %c0_14 = arith.constant 0 : index
    %c0_15 = arith.constant 0 : index
    %c2_16 = arith.constant 2 : index
    %15 = vector.load %arg1[%c0_14, %c0_15, %c2_16] : memref<1x4x326xf32, #tpu.memory_space<vmem>>, vector<1x4x288xf32>
    %16 = vector.shape_cast %15 : vector<1x4x288xf32> to vector<4x288xf32>
    %cst_17 = arith.constant dense<0.000000e+00> : vector<32x288xf32>
    %17 = tpu.matmul %14, %16, %cst_17 {dimension_numbers = #tpu.dot_dimension_numbers<[1], [0], [0], [1], [0, 0, 1, 1], [], []>} : vector<32x4xf32>, vector<4x288xf32>, vector<32x288xf32> -> vector<32x288xf32>
    %18 = arith.addf %12, %17 : vector<32x288xf32>
    %c3 = arith.constant 3 : index
    %c0_18 = arith.constant 0 : index
    %c0_19 = arith.constant 0 : index
    %19 = vector.load %arg2[%c3, %c0_18, %c0_19] : memref<9x32x4xf32, #tpu.memory_space<vmem>>, vector<1x32x4xf32>
    %20 = vector.shape_cast %19 : vector<1x32x4xf32> to vector<32x4xf32>
    %c0_20 = arith.constant 0 : index
    %c0_21 = arith.constant 0 : index
    %c18 = arith.constant 18 : index
    %21 = vector.load %arg1[%c0_20, %c0_21, %c18] : memref<1x4x326xf32, #tpu.memory_space<vmem>>, vector<1x4x288xf32>
    %22 = vector.shape_cast %21 : vector<1x4x288xf32> to vector<4x288xf32>
    %cst_22 = arith.constant dense<0.000000e+00> : vector<32x288xf32>
    %23 = tpu.matmul %20, %22, %cst_22 {dimension_numbers = #tpu.dot_dimension_numbers<[1], [0], [0], [1], [0, 0, 1, 1], [], []>} : vector<32x4xf32>, vector<4x288xf32>, vector<32x288xf32> -> vector<32x288xf32>
    %24 = arith.addf %18, %23 : vector<32x288xf32>
    %c4 = arith.constant 4 : index
    %c0_23 = arith.constant 0 : index
    %c0_24 = arith.constant 0 : index
    %25 = vector.load %arg2[%c4, %c0_23, %c0_24] : memref<9x32x4xf32, #tpu.memory_space<vmem>>, vector<1x32x4xf32>
    %26 = vector.shape_cast %25 : vector<1x32x4xf32> to vector<32x4xf32>
    %c0_25 = arith.constant 0 : index
    %c0_26 = arith.constant 0 : index
    %c19 = arith.constant 19 : index
    %27 = vector.load %arg1[%c0_25, %c0_26, %c19] : memref<1x4x326xf32, #tpu.memory_space<vmem>>, vector<1x4x288xf32>
    %28 = vector.shape_cast %27 : vector<1x4x288xf32> to vector<4x288xf32>
    %cst_27 = arith.constant dense<0.000000e+00> : vector<32x288xf32>
    %29 = tpu.matmul %26, %28, %cst_27 {dimension_numbers = #tpu.dot_dimension_numbers<[1], [0], [0], [1], [0, 0, 1, 1], [], []>} : vector<32x4xf32>, vector<4x288xf32>, vector<32x288xf32> -> vector<32x288xf32>
    %30 = arith.addf %24, %29 : vector<32x288xf32>
    %c5 = arith.constant 5 : index
    %c0_28 = arith.constant 0 : index
    %c0_29 = arith.constant 0 : index
    %31 = vector.load %arg2[%c5, %c0_28, %c0_29] : memref<9x32x4xf32, #tpu.memory_space<vmem>>, vector<1x32x4xf32>
    %32 = vector.shape_cast %31 : vector<1x32x4xf32> to vector<32x4xf32>
    %c0_30 = arith.constant 0 : index
    %c0_31 = arith.constant 0 : index
    %c20 = arith.constant 20 : index
    %33 = vector.load %arg1[%c0_30, %c0_31, %c20] : memref<1x4x326xf32, #tpu.memory_space<vmem>>, vector<1x4x288xf32>
    %34 = vector.shape_cast %33 : vector<1x4x288xf32> to vector<4x288xf32>
    %cst_32 = arith.constant dense<0.000000e+00> : vector<32x288xf32>
    %35 = tpu.matmul %32, %34, %cst_32 {dimension_numbers = #tpu.dot_dimension_numbers<[1], [0], [0], [1], [0, 0, 1, 1], [], []>} : vector<32x4xf32>, vector<4x288xf32>, vector<32x288xf32> -> vector<32x288xf32>
    %36 = arith.addf %30, %35 : vector<32x288xf32>
    %c6 = arith.constant 6 : index
    %c0_33 = arith.constant 0 : index
    %c0_34 = arith.constant 0 : index
    %37 = vector.load %arg2[%c6, %c0_33, %c0_34] : memref<9x32x4xf32, #tpu.memory_space<vmem>>, vector<1x32x4xf32>
    %38 = vector.shape_cast %37 : vector<1x32x4xf32> to vector<32x4xf32>
    %c0_35 = arith.constant 0 : index
    %c0_36 = arith.constant 0 : index
    %c36 = arith.constant 36 : index
    %39 = vector.load %arg1[%c0_35, %c0_36, %c36] : memref<1x4x326xf32, #tpu.memory_space<vmem>>, vector<1x4x288xf32>
    %40 = vector.shape_cast %39 : vector<1x4x288xf32> to vector<4x288xf32>
    %cst_37 = arith.constant dense<0.000000e+00> : vector<32x288xf32>
    %41 = tpu.matmul %38, %40, %cst_37 {dimension_numbers = #tpu.dot_dimension_numbers<[1], [0], [0], [1], [0, 0, 1, 1], [], []>} : vector<32x4xf32>, vector<4x288xf32>, vector<32x288xf32> -> vector<32x288xf32>
    %42 = arith.addf %36, %41 : vector<32x288xf32>
    %c7 = arith.constant 7 : index
    %c0_38 = arith.constant 0 : index
    %c0_39 = arith.constant 0 : index
    %43 = vector.load %arg2[%c7, %c0_38, %c0_39] : memref<9x32x4xf32, #tpu.memory_space<vmem>>, vector<1x32x4xf32>
    %44 = vector.shape_cast %43 : vector<1x32x4xf32> to vector<32x4xf32>
    %c0_40 = arith.constant 0 : index
    %c0_41 = arith.constant 0 : index
    %c37 = arith.constant 37 : index
    %45 = vector.load %arg1[%c0_40, %c0_41, %c37] : memref<1x4x326xf32, #tpu.memory_space<vmem>>, vector<1x4x288xf32>
    %46 = vector.shape_cast %45 : vector<1x4x288xf32> to vector<4x288xf32>
    %cst_42 = arith.constant dense<0.000000e+00> : vector<32x288xf32>
    %47 = tpu.matmul %44, %46, %cst_42 {dimension_numbers = #tpu.dot_dimension_numbers<[1], [0], [0], [1], [0, 0, 1, 1], [], []>} : vector<32x4xf32>, vector<4x288xf32>, vector<32x288xf32> -> vector<32x288xf32>
    %48 = arith.addf %42, %47 : vector<32x288xf32>
    %c8 = arith.constant 8 : index
    %c0_43 = arith.constant 0 : index
    %c0_44 = arith.constant 0 : index
    %49 = vector.load %arg2[%c8, %c0_43, %c0_44] : memref<9x32x4xf32, #tpu.memory_space<vmem>>, vector<1x32x4xf32>
    %50 = vector.shape_cast %49 : vector<1x32x4xf32> to vector<32x4xf32>
    %c0_45 = arith.constant 0 : index
    %c0_46 = arith.constant 0 : index
    %c38 = arith.constant 38 : index
    %51 = vector.load %arg1[%c0_45, %c0_46, %c38] : memref<1x4x326xf32, #tpu.memory_space<vmem>>, vector<1x4x288xf32>
    %52 = vector.shape_cast %51 : vector<1x4x288xf32> to vector<4x288xf32>
    %cst_47 = arith.constant dense<0.000000e+00> : vector<32x288xf32>
    %53 = tpu.matmul %50, %52, %cst_47 {dimension_numbers = #tpu.dot_dimension_numbers<[1], [0], [0], [1], [0, 0, 1, 1], [], []>} : vector<32x4xf32>, vector<4x288xf32>, vector<32x288xf32> -> vector<32x288xf32>
    %54 = arith.addf %48, %53 : vector<32x288xf32>
    %c0_48 = arith.constant 0 : index
    %c0_49 = arith.constant 0 : index
    %55 = vector.load %arg3[%c0_48, %c0_49] : memref<32x1xf32, #tpu.memory_space<vmem>>, vector<32x1xf32>
    %56 = vector.broadcast %55 : vector<32x1xf32> to vector<32x288xf32>
    %57 = arith.addf %54, %56 : vector<32x288xf32>
    %cst_50 = arith.constant 2.000000e+01 : f32
    %58 = vector.broadcast %cst_50 : f32 to vector<32x288xf32>
    %59 = arith.minimumf %57, %58 : vector<32x288xf32>
    %60 = math.exp %59 : vector<32x288xf32>
    %cst_51 = arith.constant 1.000000e+00 : f32
    %61 = vector.broadcast %cst_51 : f32 to vector<32x288xf32>
    %62 = arith.addf %61, %60 : vector<32x288xf32>
    %63 = arith.mulf %62, %62 : vector<32x288xf32>
    %cst_52 = arith.constant 1.000000e+00 : f32
    %64 = vector.broadcast %cst_52 : f32 to vector<32x288xf32>
    %65 = arith.subf %63, %64 : vector<32x288xf32>
    %cst_53 = arith.constant 1.000000e+00 : f32
    %66 = vector.broadcast %cst_53 : f32 to vector<32x288xf32>
    %67 = arith.addf %63, %66 : vector<32x288xf32>
    %68 = arith.divf %65, %67 : vector<32x288xf32>
    %69 = arith.mulf %57, %68 : vector<32x288xf32>
    %c0_54 = arith.constant 0 : index
    %c0_55 = arith.constant 0 : index
    %c0_56 = arith.constant 0 : index
    %70 = vector.load %arg4[%c0_54, %c0_55, %c0_56] : memref<1x32x288xf32, #tpu.memory_space<vmem>>, vector<1x32x288xf32>
    %71 = vector.shape_cast %70 : vector<1x32x288xf32> to vector<32x288xf32>
    %72 = vector.shape_cast %69 : vector<32x288xf32> to vector<1x32x288xf32>
    tpu.vector_store %arg4[%c0_54, %c0_55, %c0_56], %72 {strides = array<i32>} : memref<1x32x288xf32, #tpu.memory_space<vmem>>, vector<1x32x288xf32>,
    return
  }
  func.func @transform_0(%arg0: i32) -> (i32, i32, i32) {
    %c0_i32 = arith.constant 0 : i32
    %c0_i32_0 = arith.constant 0 : i32
    %c0_i32_1 = arith.constant 0 : i32
    return %arg0, %c0_i32, %c0_i32_0 : i32, i32, i32
  }
  func.func @transform_1(%arg0: i32) -> (i32, i32, i32) {
    %c0_i32 = arith.constant 0 : i32
    %c0_i32_0 = arith.constant 0 : i32
    %c0_i32_1 = arith.constant 0 : i32
    %c0_i32_2 = arith.constant 0 : i32
    return %c0_i32, %c0_i32_0, %c0_i32_1 : i32, i32, i32
  }
  func.func @transform_2(%arg0: i32) -> (i32, i32) {
    %c0_i32 = arith.constant 0 : i32
    %c0_i32_0 = arith.constant 0 : i32
    %c0_i32_1 = arith.constant 0 : i32
    return %c0_i32, %c0_i32_0 : i32, i32
  }
  func.func @transform_3(%arg0: i32) -> (i32, i32, i32) {
    %c0_i32 = arith.constant 0 : i32
    %c0_i32_0 = arith.constant 0 : i32
    %c0_i32_1 = arith.constant 0 : i32
    return %arg0, %c0_i32, %c0_i32_0 : i32, i32, i32
  }
}

</mosaic_0001>

<bundles_post_ra>
// kernel: conv_bn_activation.1
= control target key start
LH: loop header
LB: loop body
LE: loop exit
PB: predicated region body
PF: predicated region fallthrough
CT: control target
= control target key end

     0   :  { %s2745_s12 = smov 0   ;;  %s3313_s0 = inlined_call_operand.vmem [shape: f32[2,4,326], index: 0, kind: input, shape index: {}]   ;;  %s3314_s1 = inlined_call_operand.vmem [shape: f32[9,32,4], index: 1, kind: input, shape index: {}]   ;;  %s3315_s2 = inlined_call_operand.vmem [shape: f32[32,1], index: 2, kind: input, shape index: {}]   ;;  %s3316_s3 = inlined_call_operand.vmem [shape: f32[2,32,288], index: 3, kind: output, shape index: {}]  }
   0x1 LB: > { %s2365_s13 = sadd.s32 4294967295, %s2713_s12   ;;  %p2369_p0 = scmp.ge.s32.totalorder %s2713_s12, 1  ;;  %s2713_s12 = sphi %s2745_s12, %s13_s12  }
   0x2   : > { %p137_p1 = scmp.lt.s32.totalorder %s2713_s12, 3 }
   0x4   : > { %p138_p2 = pnand %p2369_p0, %p137_p1 }
   0x6   : > { %141 = sbr.rel (%p138_p2) target bundleno = 491 (0x1eb), region = 32 }
   0xb   : > { %p161_p3 = scmp.lt.s32.totalorder %s2365_s13, 1  ;;  %v2715_v0 = vmov 0.0   ;;  %s2716_s18 = smov 127   ;;  %v2141_v11 = vld [vmem:[%s3315_s2] sm:$0xff]  ;;  %v2142_v12 = vld [vmem:[%s3315_s2 + $0x8] sm:$0xff]  ;;  %v2724_v13 = vmov 0  }
   0xc   : > { %278 = vmatprep.mubr.f32.mxu0 %v2715_v0  ;;  %296 = vmatprep.mubr.f32.mxu1 %v2715_v0  ;;  %s2717_s19 = smov 126   ;;  %s2718_s20 = smov 110   ;;  %v2143_v14 = vld [vmem:[%s3315_s2 + $0x10] sm:$0xff]  ;;  %v2144_v15 = vld [vmem:[%s3315_s2 + $0x18] sm:$0xff]  ;;  %vm191_vm0 = vcmask 1039360   ;;  %vm207_vm1 = vcmask 1043456  }
   0xd   : > { %s3350_s13 = smov (!%p161_p3, %s2365_s13), 1  ;;  %s2719_s21 = smov 109   ;;  %2656 = vset.pattern.permute.xlu0 %v2724_v13  ;;  %2657 = vset.pattern.permute.xlu1 %v2724_v13  ;;  %v2372_v20 = vld [vmem:[%s3314_s1 + $0x20] sm:$0xff]  ;;  %vm194_vm2 = vcmask 31744   ;;  %v2375_v21 = vld [vmem:[%s3314_s1 + $0x38] sm:$0xff]  ;;  %v2373_v24 = vld [vmem:[%s3314_s1 + $0x28] sm:$0xff] }
   0xe   : > { %s2636_s14 = smul.u32 12, %s3350_s13  ;;  %s2720_s22 = smov 108   ;;  %vm596_vm3 = vcmask 1031168   ;;  %v2374_v26 = vld [vmem:[%s3314_s1 + $0x30] sm:$0xff]  ;;  %v171_v29 = vld [vmem:[%s3314_s1] sm:$0xff]  ;;  %v172_v31 = vld [vmem:[%s3314_s1 + $0x8] sm:$0xff] }
   0xf   : > { %s2721_s23 = smov 92   ;;  %s2722_s24 = smov 91   ;;  %vm819_vm4 = vcmask 900096   ;;  %v173_v34 = vld [vmem:[%s3314_s1 + $0x10] sm:$0xff]  ;;  %v174_v37 = vld [vmem:[%s3314_s1 + $0x18] sm:$0xff]  ;;  %vm1042_vm5 = vcmask 891904  }
  0x10   : > { %s2761_s17 = scalar_lea.vmem %s3313_s0, %s2636_s14  ;;  %s2723_s25 = smov 90   ;;  %v2398_v39 = vld [vmem:[%s3314_s1 + $0x40] sm:$0xff]  ;;  %v2399_v42 = vld [vmem:[%s3314_s1 + $0x48] sm:$0xff]  ;;  %v2400_v43 = vld [vmem:[%s3314_s1 + $0x50] sm:$0xff]  ;;  %vm1265_vm6 = vcmask 883712   ;;  %vm1488_vm7 = vcmask 752640  }
  0x11   : > { %v2764_v1 = vld [vmem:[%s2761_s17] sm:$0xff]  ;;  %v2773_v3 = vld [vmem:[%s2761_s17 + $0x8] sm:$0xf]  ;;  %v2401_v46 = vld [vmem:[%s3314_s1 + $0x58] sm:$0xff]  ;;  %vm1711_vm8 = vcmask 744448   ;;  %vm1934_vm9 = vcmask 736256  }
  0x12   : > { %185 = vrot.lane.b32.xlu1 %v2764_v1, %s2716_s18  ;;  %v2769_v2 = vcombine.high %v2764_v1, %v2764_v1  ;;  %v586_v4 = vld [vmem:[%s2761_s17 + $0x8] sm:$0xf]  ;;  %v2413_v47 = vld [vmem:[%s3314_s1 + $0x60] sm:$0xff]  ;;  %v2415_v52 = vld [vmem:[%s3314_s1 + $0x70] sm:$0xff]  ;;  %s2637_s4 = smul.u32 96, %s3350_s13  ;;  %vm2299_vm10 = vcmask 261120  }
  0x13   : > { %v809_v5 = vld [vmem:[%s2761_s17 + $0x8] sm:$0xf]  ;;  %v2416_v55 = vld [vmem:[%s3314_s1 + $0x78] sm:$0xff]  ;;  %v2428_v57 = vld [vmem:[%s3314_s1 + $0x80] sm:$0xff] }
  0x14   : > { %187 = vrot.lane.b32.xlu0 %v2769_v2, %s2716_s18  ;;  %v1032_v6 = vld [vmem:[%s2761_s17 + $0x8] sm:$0xf]  ;;  %v2430_v61 = vld [vmem:[%s3314_s1 + $0x90] sm:$0xff]  ;;  %s3280_s7 = scalar_lea.vmem %s3316_s3, %s2637_s4 }
  0x15   : > { %v1255_v7 = vld [vmem:[%s2761_s17 + $0x8] sm:$0xf] }
  0x16   : > { %592 = vrot.lane.b32.xlu1 %v2769_v2, %s2717_s19  ;;  %v1478_v8 = vld [vmem:[%s2761_s17 + $0x8] sm:$0xf] }
  0x17   : > { %v1701_v9 = vld [vmem:[%s2761_s17 + $0x8] sm:$0xf] }
  0x18   : > { %189 = vrot.lane.b32.xlu0 %v2773_v3, %s2716_s18  ;;  %v1924_v10 = vld [vmem:[%s2761_s17 + $0x8] sm:$0xf] }
  0x19   : > { %v2414_v49 = vld [vmem:[%s3314_s1 + $0x68] sm:$0xff] }
  0x1a   : > { %590 = vrot.lane.b32.xlu1 %v2764_v1, %s2717_s19  ;;  %v2429_v60 = vld [vmem:[%s3314_s1 + $0x88] sm:$0xff] }
  0x1c   : > { %594 = vrot.lane.b32.xlu0 %v586_v4, %s2717_s19  ;;  %v2444_v4 = vld [vmem:[%s3314_s1 + $0xa8] sm:$0xff] }
  0x1e   : > { %817 = vrot.lane.b32.xlu1 %v809_v5, %s2718_s20 }
  0x20   : > { %815 = vrot.lane.b32.xlu0 %v2769_v2, %s2718_s20 }
  0x22   : > { %1038 = vrot.lane.b32.xlu1 %v2769_v2, %s2719_s21 }
  0x24   : > { %813 = vrot.lane.b32.xlu0 %v2764_v1, %s2718_s20 }
  0x26   : > { %1036 = vrot.lane.b32.xlu1 %v2764_v1, %s2719_s21 }
  0x28   : > { %1040 = vrot.lane.b32.xlu0 %v1032_v6, %s2719_s21 }
  0x2a   : > { %1263 = vrot.lane.b32.xlu1 %v1255_v7, %s2720_s22  ;;  %v2445_v7 = vld [vmem:[%s3314_s1 + $0xb0] sm:$0xff] }
  0x2c   : > { %1261 = vrot.lane.b32.xlu0 %v2769_v2, %s2720_s22 }
  0x2e   : > { %1484 = vrot.lane.b32.xlu1 %v2769_v2, %s2721_s23 }
  0x30   : > { %1259 = vrot.lane.b32.xlu0 %v2764_v1, %s2720_s22 }
  0x32   : > { %1482 = vrot.lane.b32.xlu1 %v2764_v1, %s2721_s23 }
  0x34   : > { %1486 = vrot.lane.b32.xlu0 %v1478_v8, %s2721_s23 }
  0x36   : > { %1709 = vrot.lane.b32.xlu1 %v1701_v9, %s2722_s24 }
  0x38   : > { %1707 = vrot.lane.b32.xlu0 %v2769_v2, %s2722_s24 }
  0x3a   : > { %1930 = vrot.lane.b32.xlu1 %v2769_v2, %s2723_s25 }
  0x3c   : > { %1705 = vrot.lane.b32.xlu0 %v2764_v1, %s2722_s24 }
  0x3e   : > { %1928 = vrot.lane.b32.xlu1 %v2764_v1, %s2723_s25 }
  0x40   : > { %1932 = vrot.lane.b32.xlu0 %v1924_v10, %s2723_s25  ;;  %v2446_v10 = vld [vmem:[%s3314_s1 + $0xb8] sm:$0xff] }
  0x42   : > { %2152 = vperm.xlu1 %2657, %v2142_v12   ;;  %v2458_v12 = vld [vmem:[%s3314_s1 + $0xc0] sm:$0xff] }
  0x44   : > { %2147 = vperm.xlu0 %2656, %v2141_v11  }
  0x46   : > { %2157 = vperm.xlu1 %2657, %v2143_v14  }
  0x48   : > { %2162 = vperm.xlu0 %2656, %v2144_v15   ;;  %v2459_v15 = vld [vmem:[%s3314_s1 + $0xc8] sm:$0xff] }
  0x84   : > { %v186_v17 = vpop.permute.xlu1 %185 }
  0x86   : > { %v188_v16 = vpop.permute.xlu0 %187 }
  0x87   : > { %v192_v22 = vsel %vm191_vm0, %v186_v17, %v188_v16 }
  0x88   : > { %v593_v23 = vpop.permute.xlu1 %592 }
  0x8a   : > { %v190_v18 = vpop.permute.xlu0 %189 }
  0x8b   : > { %v193_v19 = vsel %vm191_vm0, %v188_v16, %v190_v18  ;;  %v2460_v16 = vld [vmem:[%s3314_s1 + $0xd0] sm:$0xff] }
  0x8c   : > { %2376 = vmatprep.subr.msk.mxu0 %vm207_vm1, %v193_v19  ;;  %2634 = vmatprep.subr.msk.mxu1 %vm207_vm1, %v193_v19  ;;  %v591_v28 = vpop.permute.xlu1 %590  ;;  %v2473_v19 = vld [vmem:[%s3314_s1 + $0xe0] sm:$0xff] }
  0x8d   : > { %2377 = vmatpush1.msk.msra.mxu0 %vm207_vm1, %v192_v22  ;;  %2635 = vmatpush1.msk.msra.mxu1 %vm207_vm1, %v192_v22  ;;  %v597_v33 = vsel %vm596_vm3, %v591_v28, %v593_v23  ;;  %v2491_v28 = vld [vmem:[%s3314_s1 + $0x118] sm:$0xff] }
  0x8e   : > { %2378 = vmatmul.mubr.msk.f32.vlgmr.msra.gmra.mxu0 %vm194_vm2, %v2372_v20  ;;  %2381 = vmatmul.mubr.msk.f32.vlgmr.msra.gmra.mxu1 %vm194_vm2, %v2375_v21  ;;  %v595_v25 = vpop.permute.xlu0 %594 }
  0x8f   : > { %2562 = vmatprep.subr.msk.mxu1 %vm207_vm1, %v190_v18  ;;  %2570 = vmatprep.subr.msk.mxu0 %vm207_vm1, %v2773_v3  ;;  %v598_v27 = vsel %vm596_vm3, %v593_v23, %v595_v25  ;;  %v2475_v23 = vld [vmem:[%s3314_s1 + $0xf0] sm:$0xff] }
  0x90   : > { %2563 = vmatpush3.msk.msra.mxu1 %vm207_vm1, %v190_v18  ;;  %2571 = vmatpush3.msk.msra.mxu0 %vm207_vm1, %v2773_v3  ;;  %v818_v32 = vpop.permute.xlu1 %817  ;;  %v2461_v18 = vld [vmem:[%s3314_s1 + $0xd8] sm:$0xff] }
  0x91   : > { %284 = vmatprep.mubr.f32.mxu0 %v2715_v0  ;;  %2564 = vmatprep.mubr.msk.f32.mxu1 %vm194_vm2, %v2372_v20 }
  0x92   : > { %2379 = vmatmul.mubr.msk.f32.gmra.mxu0 %vm194_vm2, %v2373_v24  ;;  %2565 = vmatmul.mubr.msk.f32.vlgmr.msra.gmra.mxu1 %vm194_vm2, %v2373_v24  ;;  %v816_v30 = vpop.permute.xlu0 %815  ;;  %v2476_v24 = vld [vmem:[%s3314_s1 + $0xf8] sm:$0xff] }
  0x93   : > { %2387 = vmatprep.subr.msk.mxu1 %vm207_vm1, %v2769_v2  ;;  %290 = vmatprep.mubr.f32.mxu0 %v2715_v0  ;;  %v821_v35 = vsel %vm819_vm4, %v816_v30, %v818_v32  ;;  %v2443_v2 = vld [vmem:[%s3314_s1 + $0xa0] sm:$0xff] }
  0x94   : > { %2388 = vmatpush1.msk.msra.mxu1 %vm207_vm1, %v2764_v1  ;;  %2567 = vmatprep.mubr.msk.f32.mxu1 %vm194_vm2, %v2374_v26  ;;  %v1039_v40 = vpop.permute.xlu1 %1038  ;;  %v2431_v1 = vld [vmem:[%s3314_s1 + $0x98] sm:$0xff] }
  0x95   : > { %2402 = vmatprep.subr.msk.mxu0 %vm207_vm1, %v598_v27  ;;  %2578 = vmatprep.subr.msk.mxu1 %vm207_vm1, %v595_v25  ;;  %v2490_v27 = vld [vmem:[%s3314_s1 + $0x110] sm:$0xff] }
  0x96   : > { %2380 = vmatmul.mubr.msk.f32.gmra.mxu0 %vm194_vm2, %v2374_v26  ;;  %2568 = vmatmul.mubr.msk.f32.gmra.mxu1 %vm194_vm2, %v2375_v21  ;;  %v814_v36 = vpop.permute.xlu0 %813  ;;  %v2474_v21 = vld [vmem:[%s3314_s1 + $0xe8] sm:$0xff] }
  0x97   : > { %470 = vmatprep.mubr.f32.mxu1 %v2715_v0  ;;  %2572 = vmatprep.mubr.msk.f32.mxu0 %vm194_vm2, %v171_v29  ;;  %v820_v44 = vsel %vm819_vm4, %v814_v36, %v816_v30  ;;  %v2489_v26 = vld [vmem:[%s3314_s1 + $0x108] sm:$0xff] }
  0x98   : > { %v1037_v45 = vpop.permute.xlu1 %1036 }
  0x99   : > { %v1043_v51 = vsel %vm1042_vm5, %v1037_v45, %v1039_v40 }
  0x9a   : > { %2389 = vmatmul.mubr.msk.f32.vlgmr.msra.gmra.mxu1 %vm194_vm2, %v171_v29  ;;  %2573 = vmatmul.mubr.msk.f32.vlgmr.msra.gmra.mxu0 %vm194_vm2, %v172_v31  ;;  %v1041_v38 = vpop.permute.xlu0 %1040 }
  0x9b   : > { %2403 = vmatpush1.msk.msra.mxu0 %vm207_vm1, %v597_v33  ;;  %2579 = vmatpush3.msk.msra.mxu1 %vm207_vm1, %v595_v25  ;;  %v1044_v41 = vsel %vm1042_vm5, %v1039_v40, %v1041_v38  ;;  %v2488_v25 = vld [vmem:[%s3314_s1 + $0x100] sm:$0xff] }
  0x9c   : > { %476 = vmatprep.mubr.f32.mxu1 %v2715_v0  ;;  %2575 = vmatprep.mubr.msk.f32.mxu0 %vm194_vm2, %v173_v34  ;;  %v1264_v50 = vpop.permute.xlu1 %1263 }
  0x9d   : > { %2586 = vmatprep.subr.msk.mxu0 %vm207_vm1, %v818_v32  ;;  %2417 = vmatprep.subr.msk.mxu1 %vm207_vm1, %v821_v35 }
  0x9e   : > { %2390 = vmatmul.mubr.msk.f32.gmra.mxu1 %vm194_vm2, %v172_v31  ;;  %2576 = vmatmul.mubr.msk.f32.gmra.mxu0 %vm194_vm2, %v174_v37  ;;  %v1262_v48 = vpop.permute.xlu0 %1261 }
  0x9f   : > { %482 = vmatprep.mubr.f32.mxu1 %v2715_v0  ;;  %681 = vmatprep.mubr.f32.mxu0 %v2715_v0  ;;  %v1267_v53 = vsel %vm1265_vm6, %v1262_v48, %v1264_v50 }
  0xa0   : > { %v1485_v58 = vpop.permute.xlu1 %1484 }
  0xa2   : > { %2391 = vmatmul.mubr.msk.f32.gmra.mxu1 %vm194_vm2, %v173_v34  ;;  %2404 = vmatmul.mubr.msk.f32.vlgmr.msra.gmra.mxu0 %vm194_vm2, %v2398_v39  ;;  %v1260_v54 = vpop.permute.xlu0 %1259 }
  0xa3   : > { %2587 = vmatpush3.msk.msra.mxu0 %vm207_vm1, %v818_v32  ;;  %488 = vmatprep.mubr.f32.mxu1 %v2715_v0  ;;  %v1266_v62 = vsel %vm1265_vm6, %v1260_v54, %v1262_v48 }
  0xa4   : > { %687 = vmatprep.mubr.f32.mxu0 %v2715_v0  ;;  %2432 = vmatprep.subr.msk.mxu0 %vm207_vm1, %v1044_v41  ;;  %v1483_v63 = vpop.permute.xlu1 %1482 }
  0xa5   : > { %v1489_v6 = vsel %vm1488_vm7, %v1483_v63, %v1485_v58 }
  0xa6   : > { %2392 = vmatmul.mubr.msk.f32.gmra.mxu1 %vm194_vm2, %v174_v37  ;;  %2405 = vmatmul.mubr.msk.f32.gmra.mxu0 %vm194_vm2, %v2399_v42  ;;  %v1487_v56 = vpop.permute.xlu0 %1486 }
  0xa7   : > { %693 = vmatprep.mubr.f32.mxu0 %v2715_v0  ;;  %2580 = vmatprep.mubr.msk.f32.mxu1 %vm194_vm2, %v2398_v39  ;;  %v1490_v59 = vsel %vm1488_vm7, %v1485_v58, %v1487_v56 }
  0xa8   : > { %v1710_v5 = vpop.permute.xlu1 %1709 }
  0xaa   : > { %2406 = vmatmul.mubr.msk.f32.gmra.mxu0 %vm194_vm2, %v2400_v43  ;;  %2581 = vmatmul.mubr.msk.f32.vlgmr.msra.gmra.mxu1 %vm194_vm2, %v2399_v42  ;;  %v1708_v3 = vpop.permute.xlu0 %1707 }
  0xab   : > { %2418 = vmatpush1.msk.msra.mxu1 %vm207_vm1, %v820_v44  ;;  %699 = vmatprep.mubr.f32.mxu0 %v2715_v0  ;;  %v1713_v8 = vsel %vm1711_vm8, %v1708_v3, %v1710_v5 }
  0xac   : > { %2583 = vmatprep.mubr.msk.f32.mxu1 %vm194_vm2, %v2400_v43  ;;  %2594 = vmatprep.subr.msk.mxu1 %vm207_vm1, %v1041_v38  ;;  %v1931_v13 = vpop.permute.xlu1 %1930 }
  0xae   : > { %2407 = vmatmul.mubr.msk.f32.gmra.mxu0 %vm194_vm2, %v2401_v46  ;;  %2584 = vmatmul.mubr.msk.f32.gmra.mxu1 %vm194_vm2, %v2401_v46  ;;  %v1706_v9 = vpop.permute.xlu0 %1705 }
  0xaf   : > { %904 = vmatprep.mubr.f32.mxu1 %v2715_v0  ;;  %2588 = vmatprep.mubr.msk.f32.mxu0 %vm194_vm2, %v2413_v47  ;;  %v1712_v17 = vsel %vm1711_vm8, %v1706_v9, %v1708_v3 }
  0xb0   : > { %v1929_v20 = vpop.permute.xlu1 %1928 }
  0xb1   : > { %v1935_v22 = vsel %vm1934_vm9, %v1929_v20, %v1931_v13 }
  0xb2   : > { %2419 = vmatmul.mubr.msk.f32.vlgmr.msra.gmra.mxu1 %vm194_vm2, %v2413_v47  ;;  %2589 = vmatmul.mubr.msk.f32.vlgmr.msra.gmra.mxu0 %vm194_vm2, %v2414_v49  ;;  %v1933_v11 = vpop.permute.xlu0 %1932 }
  0xb3   : > { %2433 = vmatpush1.msk.msra.mxu0 %vm207_vm1, %v1043_v51  ;;  %2595 = vmatpush3.msk.msra.mxu1 %vm207_vm1, %v1041_v38  ;;  %v1936_v14 = vsel %vm1934_vm9, %v1931_v13, %v1933_v11 }
  0xb4   : > { %910 = vmatprep.mubr.f32.mxu1 %v2715_v0  ;;  %2591 = vmatprep.mubr.msk.f32.mxu0 %vm194_vm2, %v2415_v52 }
  0xb5   : > { %2602 = vmatprep.subr.msk.mxu0 %vm207_vm1, %v1264_v50  ;;  %2447 = vmatprep.subr.msk.mxu1 %vm207_vm1, %v1267_v53 }
  0xb6   : > { %2420 = vmatmul.mubr.msk.f32.gmra.mxu1 %vm194_vm2, %v2414_v49  ;;  %2592 = vmatmul.mubr.msk.f32.gmra.mxu0 %vm194_vm2, %v2416_v55 }
  0xb7   : > { %916 = vmatprep.mubr.f32.mxu1 %v2715_v0  ;;  %1127 = vmatprep.mubr.f32.mxu0 %v2715_v0 }
  0xba   : > { %2421 = vmatmul.mubr.msk.f32.gmra.mxu1 %vm194_vm2, %v2415_v52  ;;  %2434 = vmatmul.mubr.msk.f32.vlgmr.msra.gmra.mxu0 %vm194_vm2, %v2428_v57 }
  0xbb   : > { %2603 = vmatpush3.msk.msra.mxu0 %vm207_vm1, %v1264_v50  ;;  %922 = vmatprep.mubr.f32.mxu1 %v2715_v0 }
  0xbc   : > { %1133 = vmatprep.mubr.f32.mxu0 %v2715_v0  ;;  %2462 = vmatprep.subr.msk.mxu0 %vm207_vm1, %v1490_v59 }
  0xbe   : > { %2422 = vmatmul.mubr.msk.f32.gmra.mxu1 %vm194_vm2, %v2416_v55  ;;  %2435 = vmatmul.mubr.msk.f32.gmra.mxu0 %vm194_vm2, %v2429_v60 }
  0xbf   : > { %1139 = vmatprep.mubr.f32.mxu0 %v2715_v0  ;;  %2596 = vmatprep.mubr.msk.f32.mxu1 %vm194_vm2, %v2428_v57 }
  0xc2   : > { %2436 = vmatmul.mubr.msk.f32.gmra.mxu0 %vm194_vm2, %v2430_v61  ;;  %2597 = vmatmul.mubr.msk.f32.vlgmr.msra.gmra.mxu1 %vm194_vm2, %v2429_v60 }
  0xc3   : > { %2448 = vmatpush1.msk.msra.mxu1 %vm207_vm1, %v1266_v62  ;;  %1145 = vmatprep.mubr.f32.mxu0 %v2715_v0 }
  0xc4   : > { %2599 = vmatprep.mubr.msk.f32.mxu1 %vm194_vm2, %v2430_v61  ;;  %2610 = vmatprep.subr.msk.mxu1 %vm207_vm1, %v1487_v56 }
  0xc6   : > { %2437 = vmatmul.mubr.msk.f32.gmra.mxu0 %vm194_vm2, %v2431_v1  ;;  %2600 = vmatmul.mubr.msk.f32.gmra.mxu1 %vm194_vm2, %v2431_v1 }
  0xc7   : > { %1350 = vmatprep.mubr.f32.mxu1 %v2715_v0  ;;  %2604 = vmatprep.mubr.msk.f32.mxu0 %vm194_vm2, %v2443_v2 }
  0xca   : > { %2449 = vmatmul.mubr.msk.f32.vlgmr.msra.gmra.mxu1 %vm194_vm2, %v2443_v2  ;;  %2605 = vmatmul.mubr.msk.f32.vlgmr.msra.gmra.mxu0 %vm194_vm2, %v2444_v4 }
  0xcb   : > { %2463 = vmatpush1.msk.msra.mxu0 %vm207_vm1, %v1489_v6  ;;  %2611 = vmatpush3.msk.msra.mxu1 %vm207_vm1, %v1487_v56 }
  0xcc   : > { %1356 = vmatprep.mubr.f32.mxu1 %v2715_v0  ;;  %2607 = vmatprep.mubr.msk.f32.mxu0 %vm194_vm2, %v2445_v7 }
  0xcd   : > { %2618 = vmatprep.subr.msk.mxu0 %vm207_vm1, %v1710_v5  ;;  %2477 = vmatprep.subr.msk.mxu1 %vm207_vm1, %v1713_v8 }
  0xce   : > { %2450 = vmatmul.mubr.msk.f32.gmra.mxu1 %vm194_vm2, %v2444_v4  ;;  %2608 = vmatmul.mubr.msk.f32.gmra.mxu0 %vm194_vm2, %v2446_v10 }
  0xcf   : > { %1362 = vmatprep.mubr.f32.mxu1 %v2715_v0  ;;  %1573 = vmatprep.mubr.f32.mxu0 %v2715_v0 }
  0xd2   : > { %2451 = vmatmul.mubr.msk.f32.gmra.mxu1 %vm194_vm2, %v2445_v7  ;;  %2464 = vmatmul.mubr.msk.f32.vlgmr.msra.gmra.mxu0 %vm194_vm2, %v2458_v12 }
  0xd3   : > { %2619 = vmatpush3.msk.msra.mxu0 %vm207_vm1, %v1710_v5  ;;  %1368 = vmatprep.mubr.f32.mxu1 %v2715_v0 }
  0xd4   : > { %1579 = vmatprep.mubr.f32.mxu0 %v2715_v0  ;;  %2492 = vmatprep.subr.msk.mxu0 %vm207_vm1, %v1936_v14 }
  0xd6   : > { %2452 = vmatmul.mubr.msk.f32.gmra.mxu1 %vm194_vm2, %v2446_v10  ;;  %2465 = vmatmul.mubr.msk.f32.gmra.mxu0 %vm194_vm2, %v2459_v15 }
  0xd7   : > { %1585 = vmatprep.mubr.f32.mxu0 %v2715_v0  ;;  %2612 = vmatprep.mubr.msk.f32.mxu1 %vm194_vm2, %v2458_v12 }
  0xda   : > { %2466 = vmatmul.mubr.msk.f32.gmra.mxu0 %vm194_vm2, %v2460_v16  ;;  %2613 = vmatmul.mubr.msk.f32.vlgmr.msra.gmra.mxu1 %vm194_vm2, %v2459_v15 }
  0xdb   : > { %2478 = vmatpush1.msk.msra.mxu1 %vm207_vm1, %v1712_v17  ;;  %1591 = vmatprep.mubr.f32.mxu0 %v2715_v0 }
  0xdc   : > { %2615 = vmatprep.mubr.msk.f32.mxu1 %vm194_vm2, %v2460_v16  ;;  %2626 = vmatprep.subr.msk.mxu1 %vm207_vm1, %v1933_v11 }
  0xde   : > { %2467 = vmatmul.mubr.msk.f32.gmra.mxu0 %vm194_vm2, %v2461_v18  ;;  %2616 = vmatmul.mubr.msk.f32.gmra.mxu1 %vm194_vm2, %v2461_v18 }
  0xdf   : > { %1796 = vmatprep.mubr.f32.mxu1 %v2715_v0  ;;  %2620 = vmatprep.mubr.msk.f32.mxu0 %vm194_vm2, %v2473_v19 }
  0xe2   : > { %2479 = vmatmul.mubr.msk.f32.vlgmr.msra.gmra.mxu1 %vm194_vm2, %v2473_v19  ;;  %2621 = vmatmul.mubr.msk.f32.vlgmr.msra.gmra.mxu0 %vm194_vm2, %v2474_v21 }
  0xe3   : > { %2493 = vmatpush1.msk.msra.mxu0 %vm207_vm1, %v1935_v22  ;;  %2627 = vmatpush3.msk.msra.mxu1 %vm207_vm1, %v1933_v11 }
  0xe4   : > { %1802 = vmatprep.mubr.f32.mxu1 %v2715_v0  ;;  %2623 = vmatprep.mubr.msk.f32.mxu0 %vm194_vm2, %v2475_v23 }
  0xe6   : > { %2480 = vmatmul.mubr.msk.f32.gmra.mxu1 %vm194_vm2, %v2474_v21  ;;  %2624 = vmatmul.mubr.msk.f32.gmra.mxu0 %vm194_vm2, %v2476_v24 }
  0xe7   : > { %1808 = vmatprep.mubr.f32.mxu1 %v2715_v0  ;;  %2019 = vmatprep.mubr.f32.mxu0 %v2715_v0 }
  0xea   : > { %2481 = vmatmul.mubr.msk.f32.gmra.mxu1 %vm194_vm2, %v2475_v23  ;;  %2494 = vmatmul.mubr.msk.f32.vlgmr.msra.gmra.mxu0 %vm194_vm2, %v2488_v25 }
  0xeb   : > { %1814 = vmatprep.mubr.f32.mxu1 %v2715_v0  ;;  %2025 = vmatprep.mubr.f32.mxu0 %v2715_v0 }
  0xee   : > { %2482 = vmatmul.mubr.msk.f32.gmra.mxu1 %vm194_vm2, %v2476_v24  ;;  %2495 = vmatmul.mubr.msk.f32.gmra.mxu0 %vm194_vm2, %v2489_v26 }
  0xef   : > { %2031 = vmatprep.mubr.f32.mxu0 %v2715_v0  ;;  %2628 = vmatprep.mubr.msk.f32.mxu1 %vm194_vm2, %v2488_v25 }
  0xf2   : > { %2496 = vmatmul.mubr.msk.f32.gmra.mxu0 %vm194_vm2, %v2490_v27  ;;  %2629 = vmatmul.mubr.msk.f32.vlgmr.msra.gmra.mxu1 %vm194_vm2, %v2489_v26 }
  0xf3   : > { %2037 = vmatprep.mubr.f32.mxu0 %v2715_v0  ;;  %2631 = vmatprep.mubr.msk.f32.mxu1 %vm194_vm2, %v2490_v27 }
  0xf6   : > { %2497 = vmatmul.mubr.msk.f32.gmra.mxu0 %vm194_vm2, %v2491_v28  ;;  %2632 = vmatmul.mubr.msk.f32.gmra.mxu1 %vm194_vm2, %v2491_v28 }
 0x14e   : > { %v280_v29 = vpop.f32.mrf.mxu0  ;;  %v298_v30 = vpop.f32.mrf.mxu1 }
 0x150   : > { %v282_v31 = vpop.f32.mrf.mxu0  ;;  %v300_v32 = vpop.f32.mrf.mxu1 }
 0x152   : > { %v286_v33 = vpop.f32.mrf.mxu0  ;;  %v2566_v34 = vpop.f32.mrf.mxu1 }
 0x154   : > { %v288_v35 = vpop.f32.mrf.mxu0  ;;  %v369_v36 = vpop.f32.mrf.mxu1 }
 0x156   : > { %v292_v37 = vpop.f32.mrf.mxu0  ;;  %v2569_v0 = vpop.f32.mrf.mxu1 }
 0x158   : > { %v294_v38 = vpop.f32.mrf.mxu0  ;;  %v379_v39 = vpop.f32.mrf.mxu1 }
 0x15a   : > { %v472_v40 = vpop.f32.mrf.mxu1  ;;  %v2574_v41 = vpop.f32.mrf.mxu0 }
 0x15b   : > { %v3079_v42 = vadd.f32 %v472_v40, %v280_v29  ;;  %v3081_v43 = vadd.f32 %v2574_v41, %v2566_v34 }
 0x15c   : > { %v474_v44 = vpop.f32.mrf.mxu1  ;;  %v561_v45 = vpop.f32.mrf.mxu0 }
 0x15d   : > { %v3083_v46 = vadd.f32 %v474_v44, %v282_v31  ;;  %v3085_v47 = vadd.f32 %v561_v45, %v369_v36 }
 0x15e   : > { %v478_v48 = vpop.f32.mrf.mxu1  ;;  %v2577_v49 = vpop.f32.mrf.mxu0 }
 0x15f   : > { %v3087_v50 = vadd.f32 %v478_v48, %v286_v33  ;;  %v3089_v51 = vadd.f32 %v2577_v49, %v2569_v0 }
 0x160   : > { %v480_v52 = vpop.f32.mrf.mxu1  ;;  %v571_v53 = vpop.f32.mrf.mxu0 }
 0x161   : > { %v3091_v54 = vadd.f32 %v480_v52, %v288_v35  ;;  %v3093_v55 = vadd.f32 %v571_v53, %v379_v39 }
 0x162   : > { %v484_v56 = vpop.f32.mrf.mxu1  ;;  %v3095_v57 = vpop.f32.mrf.mxu0 }
 0x163   : > { %v3097_v58 = vadd.f32 %v484_v56, %v292_v37 }
 0x164   : > { %v486_v59 = vpop.f32.mrf.mxu1  ;;  %v3099_v60 = vpop.f32.mrf.mxu0 }
 0x165   : > { %v3101_v61 = vadd.f32 %v486_v59, %v294_v38 }
 0x166   : > { %v490_v62 = vpop.f32.mrf.mxu1  ;;  %v689_v63 = vpop.f32.mrf.mxu0 }
 0x167   : > { %v3103_v1 = vadd.f32 %v490_v62, %v298_v30 }
 0x168   : > { %v492_v2 = vpop.f32.mrf.mxu1  ;;  %v691_v3 = vpop.f32.mrf.mxu0 }
 0x169   : > { %v3105_v4 = vadd.f32 %v492_v2, %v300_v32 }
 0x16a   : > { %v695_v5 = vpop.f32.mrf.mxu0  ;;  %v2582_v6 = vpop.f32.mrf.mxu1 }
 0x16c   : > { %v697_v7 = vpop.f32.mrf.mxu0  ;;  %v772_v8 = vpop.f32.mrf.mxu1 }
 0x16e   : > { %v701_v9 = vpop.f32.mrf.mxu0  ;;  %v2585_v10 = vpop.f32.mrf.mxu1 }
 0x170   : > { %v703_v11 = vpop.f32.mrf.mxu0  ;;  %v782_v12 = vpop.f32.mrf.mxu1 }
 0x172   : > { %v906_v13 = vpop.f32.mrf.mxu1  ;;  %v2590_v14 = vpop.f32.mrf.mxu0 }
 0x174   : > { %v908_v15 = vpop.f32.mrf.mxu1  ;;  %v995_v16 = vpop.f32.mrf.mxu0 }
 0x176   : > { %v912_v17 = vpop.f32.mrf.mxu1  ;;  %v2593_v18 = vpop.f32.mrf.mxu0 }
 0x178   : > { %v3107_v19 = vpop.f32.mrf.mxu1  ;;  %v3109_v20 = vpop.f32.mrf.mxu0 }
 0x17a   : > { %v3111_v21 = vpop.f32.mrf.mxu1  ;;  %v1129_v22 = vpop.f32.mrf.mxu0 }
 0x17c   : > { %v920_v23 = vpop.f32.mrf.mxu1  ;;  %v3113_v24 = vpop.f32.mrf.mxu0 }
 0x17e   : > { %v3115_v25 = vpop.f32.mrf.mxu1  ;;  %v3117_v26 = vpop.f32.mrf.mxu0 }
 0x180   : > { %v3119_v27 = vpop.f32.mrf.mxu1  ;;  %v3121_v28 = vpop.f32.mrf.mxu0 }
 0x182   : > { %v3123_v29 = vpop.f32.mrf.mxu0  ;;  %v3125_v30 = vpop.f32.mrf.mxu1 }
 0x184   : > { %v3127_v31 = vpop.f32.mrf.mxu0  ;;  %v3129_v32 = vpop.f32.mrf.mxu1 }
 0x186   : > { %v3131_v33 = vpop.f32.mrf.mxu0  ;;  %v3133_v34 = vpop.f32.mrf.mxu1 }
 0x188   : > { %v3135_v35 = vpop.f32.mrf.mxu0  ;;  %v3137_v36 = vpop.f32.mrf.mxu1 }
 0x18a   : > { %v1352_v37 = vpop.f32.mrf.mxu1  ;;  %v3139_v0 = vpop.f32.mrf.mxu0 }
 0x18c   : > { %v1354_v38 = vpop.f32.mrf.mxu1  ;;  %v3141_v39 = vpop.f32.mrf.mxu0 }
 0x18d   : > { %3317 = vst [vmem:[#allocation2_spill] sm:$0xff] %v3141_v39 }
 0x18e   : > { %v3143_v40 = vpop.f32.mrf.mxu1  ;;  %v3145_v41 = vpop.f32.mrf.mxu0 }
 0x18f   : > { %3318 = vst [vmem:[#allocation3_spill] sm:$0xff] %v3145_v41 }
 0x190   : > { %v3147_v44 = vpop.f32.mrf.mxu1  ;;  %v3149_v45 = vpop.f32.mrf.mxu0 }
 0x191   : > { %3319 = vst [vmem:[#allocation4_spill] sm:$0xff] %v3147_v44  ;;  %3320 = vst [vmem:[#allocation5_spill] sm:$0xff] %v3149_v45 }
 0x192   : > { %v3151_v48 = vpop.f32.mrf.mxu1  ;;  %v1575_v49 = vpop.f32.mrf.mxu0 }
 0x193   : > { %3321 = vst [vmem:[#allocation6_spill] sm:$0xff] %v3151_v48 }
 0x194   : > { %v3153_v52 = vpop.f32.mrf.mxu1  ;;  %v1577_v53 = vpop.f32.mrf.mxu0 }
 0x195   : > { %3322 = vst [vmem:[#allocation7_spill] sm:$0xff] %v3153_v52 }
 0x196   : > { %v3155_v56 = vpop.f32.mrf.mxu1  ;;  %v3157_v59 = vpop.f32.mrf.mxu0 }
 0x197   : > { %3323 = vst [vmem:[#allocation8_spill] sm:$0xff] %v3155_v56  ;;  %3324 = vst [vmem:[#allocation9_spill] sm:$0xff] %v3157_v59  ;;  %v791_v56 = vadd.f32 %v3095_v57, %v3079_v42  ;;  %v800_v42 = vadd.f32 %v701_v9, %v3103_v1 }
 0x198   : > { %v3159_v62 = vpop.f32.mrf.mxu1  ;;  %v3161_v2 = vpop.f32.mrf.mxu0 }
 0x199   : > { %3325 = vst [vmem:[#allocation10_spill] sm:$0xff] %v3159_v62  ;;  %3326 = vst [vmem:[#allocation11_spill] sm:$0xff] %v3161_v2  ;;  %v792_v62 = vadd.f32 %v3099_v60, %v3083_v46  ;;  %v794_v2 = vadd.f32 %v689_v63, %v3087_v50  ;;  %v802_v46 = vadd.f32 %v2585_v10, %v3089_v51 }
 0x19a   : > { %v3163_v39 = vpop.f32.mrf.mxu0  ;;  %v3165_v41 = vpop.f32.mrf.mxu1  ;;  %v1014_v57 = vadd.f32 %v906_v13, %v791_v56  ;;  %v801_v50 = vadd.f32 %v703_v11, %v3105_v4  ;;  %v1023_v9 = vadd.f32 %v3115_v25, %v800_v42 }
 0x19b   : > { %3327 = vst [vmem:[#allocation12_spill] sm:$0xff] %v3163_v39  ;;  %3328 = vst [vmem:[#allocation13_spill] sm:$0xff] %v3165_v41  ;;  %v795_v39 = vadd.f32 %v691_v3, %v3091_v54  ;;  %v797_v41 = vadd.f32 %v695_v5, %v3097_v58  ;;  %v799_v54 = vadd.f32 %v782_v12, %v3093_v55 }
 0x19c   : > { %v3167_v44 = vpop.f32.mrf.mxu0  ;;  %v3169_v45 = vpop.f32.mrf.mxu1  ;;  %v1015_v60 = vadd.f32 %v908_v15, %v792_v62  ;;  %v1017_v3 = vadd.f32 %v912_v17, %v794_v2  ;;  %v1025_v5 = vadd.f32 %v2593_v18, %v802_v46  ;;  %v1024_v12 = vadd.f32 %v3119_v27, %v801_v50  ;;  %v3339_v2 = vld [vmem:[#allocation7_spill] sm:$0xff] }
 0x19d   : > { %3329 = vst [vmem:[#allocation14_spill] sm:$0xff] %v3167_v44  ;;  %3330 = vst [vmem:[#allocation15_spill] sm:$0xff] %v3169_v45  ;;  %v796_v44 = vadd.f32 %v2582_v6, %v3081_v43  ;;  %v798_v45 = vadd.f32 %v697_v7, %v3101_v61  ;;  %v1237_v6 = vadd.f32 %v1129_v22, %v1014_v57 }
 0x19e   : > { %v3171_v48 = vpop.f32.mrf.mxu0  ;;  %v3173_v52 = vpop.f32.mrf.mxu1  ;;  %v1022_v1 = vadd.f32 %v3109_v20, %v799_v54  ;;  %v1020_v51 = vadd.f32 %v3111_v21, %v797_v41  ;;  %v1238_v55 = vadd.f32 %v3113_v24, %v1015_v60  ;;  %v1240_v10 = vadd.f32 %v3117_v26, %v1017_v3  ;;  %v3335_v41 = vld [vmem:[#allocation4_spill] sm:$0xff]  ;;  %v3338_v56 = vld [vmem:[#allocation9_spill] sm:$0xff] }
 0x19f   : > { %3331 = vst [vmem:[#allocation16_spill] sm:$0xff] %v3171_v48  ;;  %3332 = vst [vmem:[#allocation17_spill] sm:$0xff] %v3173_v52  ;;  %v793_v52 = vadd.f32 %v772_v8, %v3085_v47  ;;  %v1019_v58 = vadd.f32 %v2590_v14, %v796_v44  ;;  %v1018_v47 = vadd.f32 %v3107_v19, %v795_v39  ;;  %v3334_v39 = vld [vmem:[#allocation3_spill] sm:$0xff]  ;;  %v3336_v44 = vld [vmem:[#allocation5_spill] sm:$0xff] }
 0x1a0   : > { %v3184_v59 = vpop.f32.mrf.mxu0  ;;  %v3186_v48 = vpop.f32.mrf.mxu1  ;;  %v1021_v7 = vadd.f32 %v920_v23, %v798_v45  ;;  %v1460_v11 = vadd.f32 %v1352_v37, %v1237_v6  ;;  %v1243_v14 = vadd.f32 %v3123_v29, %v1020_v51  ;;  %v1461_v20 = vadd.f32 %v1354_v38, %v1238_v55  ;;  %v3340_v46 = vld [vmem:[#allocation8_spill] sm:$0xff]  ;;  %v3341_v50 = vld [vmem:[#allocation10_spill] sm:$0xff] }
 0x1a1   : > { %v1016_v61 = vadd.f32 %v995_v16, %v793_v52  ;;  %v1241_v13 = vadd.f32 %v3121_v28, %v1018_v47  ;;  %v1242_v15 = vadd.f32 %v3125_v30, %v1019_v58  ;;  %v1246_v22 = vadd.f32 %v3131_v33, %v1023_v9  ;;  %v3215_v37 = vpop.permute.xlu0 %2147  ;;  %v3342_v58 = vld [vmem:[#allocation11_spill] sm:$0xff] }
 0x1a2   : > { %v1798_v43 = vpop.f32.mrf.mxu1  ;;  %v3193_v63 = vpop.f32.mrf.mxu0  ;;  %v1244_v18 = vadd.f32 %v3127_v31, %v1021_v7  ;;  %v1683_v21 = vadd.f32 %v1575_v49, %v1460_v11  ;;  %v1248_v23 = vadd.f32 %v3133_v34, %v1025_v5  ;;  %v1247_v24 = vadd.f32 %v3135_v35, %v1024_v12  ;;  %v3337_v49 = vld [vmem:[#allocation6_spill] sm:$0xff]  ;;  %v3343_v3 = vld [vmem:[#allocation12_spill] sm:$0xff]  ;;  %v3344_v51 = vld [vmem:[#allocation13_spill] sm:$0xff] }
 0x1a3   : > { %v1239_v19 = vadd.f32 %v3129_v32, %v1016_v61  ;;  %v1245_v25 = vadd.f32 %v3137_v36, %v1022_v1  ;;  %v1465_v28 = vadd.f32 %v3139_v0, %v1242_v15  ;;  %v1463_v29 = vadd.f32 %v3143_v40, %v1240_v10  ;;  %v3333_v32 = vld [vmem:[#allocation2_spill] sm:$0xff] }
 0x1a4   : > { %v1800_v8 = vpop.f32.mrf.mxu1  ;;  %v3198_v4 = vpop.f32.mrf.mxu0  ;;  %v1684_v30 = vadd.f32 %v1577_v53, %v1461_v20  ;;  %v1906_v31 = vadd.f32 %v1798_v43, %v1683_v21  ;;  %v1471_v33 = vadd.f32 %v3334_v39, %v1248_v23  ;;  %v1464_v34 = vadd.f32 %v3335_v41, %v1241_v13  ;;  %v3346_v9 = vld [vmem:[#allocation15_spill] sm:$0xff] }
 0x1a5   : > { %v1462_v38 = vadd.f32 %v3333_v32, %v1239_v19  ;;  %v1468_v35 = vadd.f32 %v3336_v44, %v1245_v25  ;;  %v1466_v52 = vadd.f32 %v3337_v49, %v1243_v14  ;;  %v1686_v0 = vadd.f32 %v3338_v56, %v1463_v29  ;;  %v2153_v53 = vpop.permute.xlu1 %2152 }
 0x1a6   : > { %v1804_v16 = vpop.f32.mrf.mxu1  ;;  %v2625_v17 = vpop.f32.mrf.mxu0  ;;  %v1907_v62 = vadd.f32 %v1800_v8, %v1684_v30  ;;  %v1467_v42 = vadd.f32 %v3339_v2, %v1244_v18  ;;  %v1469_v57 = vadd.f32 %v3340_v46, %v1246_v22  ;;  %v1470_v54 = vadd.f32 %v3341_v50, %v1247_v24  ;;  %v3345_v8 = vld [vmem:[#allocation14_spill] sm:$0xff]  ;;  %v3347_v11 = vld [vmem:[#allocation16_spill] sm:$0xff]  ;;  %v3348_v15 = vld [vmem:[#allocation17_spill] sm:$0xff] }
 0x1a7   : > { %v1687_v60 = vadd.f32 %v3342_v58, %v1464_v34  ;;  %v1689_v5 = vadd.f32 %v3343_v3, %v1466_v52  ;;  %v1909_v6 = vadd.f32 %v1804_v16, %v1686_v0  ;;  %v1688_v7 = vadd.f32 %v3344_v51, %v1465_v28  ;;  %v2163_v3 = vpop.permute.xlu0 %2162 }
 0x1a8   : > { %v1806_v26 = vpop.f32.mrf.mxu1  ;;  %v1897_v27 = vpop.f32.mrf.mxu0  ;;  %v1690_v55 = vadd.f32 %v3345_v8, %v1467_v42  ;;  %v1685_v10 = vadd.f32 %v3346_v9, %v1462_v38  ;;  %v1692_v12 = vadd.f32 %v3347_v11, %v1469_v57  ;;  %v1694_v18 = vadd.f32 %v3348_v15, %v1471_v33 }
 0x1a9   : > { %v1693_v21 = vadd.f32 %v3184_v59, %v1470_v54  ;;  %v1691_v22 = vadd.f32 %v3186_v48, %v1468_v35  ;;  %v1911_v23 = vadd.f32 %v3193_v63, %v1688_v7  ;;  %v1910_v24 = vadd.f32 %v1806_v26, %v1687_v60  ;;  %v2158_v38 = vpop.permute.xlu1 %2157 }
 0x1aa   : > { %v1810_v45 = vpop.f32.mrf.mxu1  ;;  %v2021_v36 = vpop.f32.mrf.mxu0  ;;  %v1908_v39 = vadd.f32 %v3198_v4, %v1685_v10  ;;  %v1917_v33 = vadd.f32 %v2625_v17, %v1694_v18 }
 0x1ab   : > { %v2129_v40 = vadd.f32 %v2021_v36, %v1906_v31  ;;  %v1912_v29 = vadd.f32 %v1810_v45, %v1689_v5  ;;  %v1914_v35 = vadd.f32 %v1897_v27, %v1691_v22 }
 0x1ac   : > { %v1812_v43 = vpop.f32.mrf.mxu1  ;;  %v2023_v61 = vpop.f32.mrf.mxu0 }
 0x1ad   : > { %v2130_v47 = vadd.f32 %v2023_v61, %v1907_v62  ;;  %v3229_v1 = vadd.f32 %v3215_v37, %v2129_v40  ;;  %v1913_v41 = vadd.f32 %v1812_v43, %v1690_v55 }
 0x1ae   : > { %v1816_v13 = vpop.f32.mrf.mxu1  ;;  %v2027_v14 = vpop.f32.mrf.mxu0 }
 0x1af   : > { %v3237_v19 = vadd.f32 %v3215_v37, %v2130_v47  ;;  %v2177_v16 = vmin.f32 %v3229_v1, 20.0  ;;  %v2132_v20 = vadd.f32 %v2027_v14, %v1909_v6  ;;  %v1915_v45 = vadd.f32 %v1816_v13, %v1692_v12 }
 0x1b0   : > { %v1818_v25 = vpop.f32.mrf.mxu1  ;;  %v2029_v28 = vpop.f32.mrf.mxu0 }
 0x1b1   : > { %v2178_v30 = vmin.f32 %v3237_v19, 20.0  ;;  %v2189_v31 = vmul.f32 1.442695, %v2177_v16  ;;  %v3244_v32 = vadd.f32 %v2153_v53, %v2132_v20  ;;  %v2133_v34 = vadd.f32 %v2029_v28, %v1910_v24 }
 0x1b2   : > { %v2033_v59 = vpop.f32.mrf.mxu0  ;;  %v2630_v44 = vpop.f32.mrf.mxu1  ;;  %v1916_v62 = vadd.f32 %v1818_v25, %v1693_v21 }
 0x1b3   : > { %2659 = vpow2.f32 %v2189_v31  ;;  %v2191_v48 = vmul.f32 1.442695, %v2178_v30  ;;  %v2180_v63 = vmin.f32 %v3244_v32, 20.0  ;;  %v2135_v26 = vadd.f32 %v2033_v59, %v1912_v29 }
 0x1b4   : > { %v3248_v36 = vadd.f32 %v2153_v53, %v2133_v34  ;;  %v2134_v49 = vadd.f32 %v2630_v44, %v1911_v23  ;;  %v2035_v52 = vpop.f32.mrf.mxu0  ;;  %v2110_v56 = vpop.f32.mrf.mxu1 }
 0x1b5   : > { %2661 = vpow2.f32 %v2191_v48  ;;  %v2195_v0 = vmul.f32 1.442695, %v2180_v63  ;;  %v3250_v4 = vadd.f32 %v2158_v38, %v2135_v26  ;;  %v2136_v17 = vadd.f32 %v2035_v52, %v1913_v41 }
 0x1b6   : > { %v2181_v40 = vmin.f32 %v3248_v36, 20.0  ;;  %v3253_v2 = vadd.f32 %v2153_v53, %v2134_v49  ;;  %v2131_v42 = vadd.f32 %v2110_v56, %v1908_v39  ;;  %v2039_v46 = vpop.f32.mrf.mxu0  ;;  %v2633_v57 = vpop.f32.mrf.mxu1 }
 0x1b7   : > { %2663 = vpow2.f32 %v2195_v0  ;;  %v2183_v27 = vmin.f32 %v3250_v4, 20.0  ;;  %v3256_v50 = vadd.f32 %v2158_v38, %v2136_v17  ;;  %v2138_v54 = vadd.f32 %v2039_v46, %v1915_v45 }
 0x1b8   : > { %v2197_v58 = vmul.f32 1.442695, %v2181_v40  ;;  %v2182_v60 = vmin.f32 %v3253_v2, 20.0  ;;  %v3260_v43 = vadd.f32 %v3215_v37, %v2131_v42  ;;  %v2140_v61 = vadd.f32 %v2633_v57, %v1917_v33  ;;  %v2041_v5 = vpop.f32.mrf.mxu0  ;;  %v2120_v7 = vpop.f32.mrf.mxu1 }
 0x1b9   : > { %v2201_v53 = vmul.f32 1.442695, %v2183_v27  ;;  %v2184_v6 = vmin.f32 %v3256_v50, 20.0  ;;  %v3263_v47 = vadd.f32 %v2163_v3, %v2138_v54  ;;  %v2139_v51 = vadd.f32 %v2041_v5, %v1916_v62 }
 0x1ba   : > { %2665 = vpow2.f32 %v2197_v58  ;;  %v2199_v8 = vmul.f32 1.442695, %v2182_v60  ;;  %v2179_v55 = vmin.f32 %v3260_v43, 20.0  ;;  %v3266_v9 = vadd.f32 %v2163_v3, %v2140_v61 }
 0x1bb   : > { %2667 = vpow2.f32 %v2201_v53  ;;  %v2203_v10 = vmul.f32 1.442695, %v2184_v6  ;;  %v2186_v37 = vmin.f32 %v3263_v47, 20.0  ;;  %v3269_v11 = vadd.f32 %v2163_v3, %v2139_v51 }
 0x1bc   : > { %2669 = vpow2.f32 %v2199_v8  ;;  %v2193_v12 = vmul.f32 1.442695, %v2179_v55  ;;  %v2188_v13 = vmin.f32 %v3266_v9, 20.0  ;;  %v2137_v14 = vadd.f32 %v2120_v7, %v1914_v35 }
 0x1bd   : > { %2671 = vpow2.f32 %v2203_v10  ;;  %v2207_v15 = vmul.f32 1.442695, %v2186_v37  ;;  %v2187_v18 = vmin.f32 %v3269_v11, 20.0 }
 0x1be   : > { %2673 = vpow2.f32 %v2193_v12  ;;  %v2211_v16 = vmul.f32 1.442695, %v2188_v13  ;;  %v3273_v20 = vadd.f32 %v2158_v38, %v2137_v14 }
 0x1bf   : > { %2675 = vpow2.f32 %v2207_v15  ;;  %v2209_v21 = vmul.f32 1.442695, %v2187_v18 }
 0x1c0   : > { %v2660_v22 = vpop.eup %2659  ;;  %2677 = vpow2.f32 %v2211_v16  ;;  %v2185_v23 = vmin.f32 %v3273_v20, 20.0 }
 0x1c1   : > { %v2213_v24 = vadd.f32 1.0, %v2660_v22  ;;  %2679 = vpow2.f32 %v2209_v21 }
 0x1c2   : > { %v2662_v25 = vpop.eup %2661  ;;  %v2205_v28 = vmul.f32 1.442695, %v2185_v23 }
 0x1c3   : > { %v2214_v29 = vadd.f32 1.0, %v2662_v25  ;;  %v2225_v30 = vmul.f32 %v2213_v24, %v2213_v24 }
 0x1c4   : > { %v2664_v31 = vpop.eup %2663  ;;  %2681 = vpow2.f32 %v2205_v28 }
 0x1c5   : > { %v2226_v39 = vmul.f32 %v2214_v29, %v2214_v29  ;;  %v2249_v33 = vadd.f32 1.0, %v2225_v30  ;;  %v2216_v41 = vadd.f32 1.0, %v2664_v31  ;;  %v2503_v12 = vadd.f32 -1.0, %v2225_v30 }
 0x1c7   : > { %v2666_v34 = vpop.eup %2665  ;;  %v2250_v38 = vadd.f32 1.0, %v2226_v39  ;;  %2683 = vrcp.f32 %v2249_v33  ;;  %v2228_v59 = vmul.f32 %v2216_v41, %v2216_v41  ;;  %v2504_v16 = vadd.f32 -1.0, %v2226_v39 }
 0x1c8   : > { %v2668_v44 = vpop.eup %2667  ;;  %v2217_v48 = vadd.f32 1.0, %v2666_v34 }
 0x1c9   : > { %v2670_v63 = vpop.eup %2669  ;;  %2685 = vrcp.f32 %v2250_v38  ;;  %v2252_v26 = vadd.f32 1.0, %v2228_v59  ;;  %v2219_v35 = vadd.f32 1.0, %v2668_v44  ;;  %v2506_v29 = vadd.f32 -1.0, %v2228_v59 }
 0x1ca   : > { %v2672_v45 = vpop.eup %2671  ;;  %v2229_v49 = vmul.f32 %v2217_v48, %v2217_v48  ;;  %v2218_v52 = vadd.f32 1.0, %v2670_v63 }
 0x1cb   : > { %v2674_v56 = vpop.eup %2673  ;;  %2687 = vrcp.f32 %v2252_v26  ;;  %v2231_v0 = vmul.f32 %v2219_v35, %v2219_v35  ;;  %v2220_v17 = vadd.f32 1.0, %v2672_v45 }
 0x1cc   : > { %v2676_v62 = vpop.eup %2675  ;;  %v2253_v40 = vadd.f32 1.0, %v2229_v49  ;;  %v2230_v42 = vmul.f32 %v2218_v52, %v2218_v52  ;;  %v2215_v46 = vadd.f32 1.0, %v2674_v56  ;;  %v2507_v33 = vadd.f32 -1.0, %v2229_v49 }
 0x1cd   : > { %v2678_v57 = vpop.eup %2677  ;;  %v2255_v27 = vadd.f32 1.0, %v2231_v0  ;;  %v2232_v54 = vmul.f32 %v2220_v17, %v2220_v17  ;;  %v2222_v58 = vadd.f32 1.0, %v2676_v62  ;;  %v2509_v38 = vadd.f32 -1.0, %v2231_v0 }
 0x1ce   : > { %v2680_v60 = vpop.eup %2679  ;;  %2689 = vrcp.f32 %v2253_v40  ;;  %v2254_v61 = vadd.f32 1.0, %v2230_v42  ;;  %v2227_v3 = vmul.f32 %v2215_v46, %v2215_v46  ;;  %v2224_v53 = vadd.f32 1.0, %v2678_v57 }
 0x1cf   : > { %2691 = vrcp.f32 %v2255_v27  ;;  %v2256_v5 = vadd.f32 1.0, %v2232_v54  ;;  %v2234_v51 = vmul.f32 %v2222_v58, %v2222_v58  ;;  %v2223_v55 = vadd.f32 1.0, %v2680_v60 }
 0x1d0   : > { %2693 = vrcp.f32 %v2254_v61  ;;  %v2251_v6 = vadd.f32 1.0, %v2227_v3  ;;  %v2236_v8 = vmul.f32 %v2224_v53, %v2224_v53  ;;  %v2508_v63 = vadd.f32 -1.0, %v2230_v42 }
 0x1d1   : > { %v2682_v7 = vpop.eup %2681  ;;  %2695 = vrcp.f32 %v2256_v5  ;;  %v2258_v10 = vadd.f32 1.0, %v2234_v51  ;;  %v2235_v14 = vmul.f32 %v2223_v55, %v2223_v55  ;;  %v2510_v26 = vadd.f32 -1.0, %v2232_v54 }
 0x1d2   : > { %2697 = vrcp.f32 %v2251_v6  ;;  %v2221_v37 = vadd.f32 1.0, %v2682_v7  ;;  %v2260_v13 = vadd.f32 1.0, %v2236_v8  ;;  %v2505_v49 = vadd.f32 -1.0, %v2227_v3 }
 0x1d3   : > { %2699 = vrcp.f32 %v2258_v10  ;;  %v2259_v22 = vadd.f32 1.0, %v2235_v14  ;;  %v2512_v62 = vadd.f32 -1.0, %v2234_v51 }
 0x1d4   : > { %v2684_v15 = vpop.eup %2683  ;;  %v2233_v18 = vmul.f32 %v2221_v37, %v2221_v37  ;;  %2701 = vrcp.f32 %v2260_v13 }
 0x1d5   : > { %v2262_v21 = vmul.f32 %v2684_v15, %v2503_v12  ;;  %2703 = vrcp.f32 %v2259_v22 }
 0x1d6   : > { %v2686_v23 = vpop.eup %2685  ;;  %v2257_v24 = vadd.f32 1.0, %v2233_v18 }
 0x1d7   : > { %v2264_v25 = vmul.f32 %v2686_v23, %v2504_v16  ;;  %v2285_v28 = vmul.f32 %v2262_v21, %v3229_v1 }
 0x1d8   : > { %v2688_v30 = vpop.eup %2687  ;;  %2705 = vrcp.f32 %v2257_v24 }
 0x1d9   : > { %v2286_v31 = vmul.f32 %v2264_v25, %v3237_v19  ;;  %2297 = vst [vmem:[%s3280_s7] sm:$0xff] %v2285_v28  ;;  %v2268_v39 = vmul.f32 %v2688_v30, %v2506_v29 }
 0x1db   : > { %v2690_v41 = vpop.eup %2689  ;;  %2298 = vst [vmem:[%s3280_s7 + $0x8] sm:$0xff] %v2286_v31  ;;  %v2288_v34 = vmul.f32 %v2268_v39, %v3244_v32 }
 0x1dc   : > { %v2692_v44 = vpop.eup %2691  ;;  %v2270_v48 = vmul.f32 %v2690_v41, %v2507_v33 }
 0x1dd   : > { %v2694_v1 = vpop.eup %2693  ;;  %2301 = vst [vmem:[%s3280_s7 + $0x18] sm:$0xff] %v2288_v34  ;;  %v2274_v59 = vmul.f32 %v2692_v44, %v2509_v38 }
 0x1de   : > { %v2696_v35 = vpop.eup %2695  ;;  %v2289_v19 = vmul.f32 %v2270_v48, %v3248_v36  ;;  %v2272_v45 = vmul.f32 %v2694_v1, %v2508_v63  ;;  %v2514_v36 = vadd.f32 -1.0, %v2236_v8 }
 0x1df   : > { %v2698_v52 = vpop.eup %2697  ;;  %v2291_v32 = vmul.f32 %v2274_v59, %v3250_v4  ;;  %v2276_v56 = vmul.f32 %v2696_v35, %v2510_v26 }
 0x1e0   : > { %2302 = vst [vmem:[%s3280_s7 + $0x20] sm:$0xff] %v2289_v19  ;;  %v2290_v0 = vmul.f32 %v2272_v45, %v3253_v2  ;;  %v2266_v17 = vmul.f32 %v2698_v52, %v2505_v49  ;;  %v2700_v40 = vpop.eup %2699  ;;  %v2513_v2 = vadd.f32 -1.0, %v2235_v14 }
 0x1e1   : > { %2304 = vst [vmem:[%s3280_s7 + $0x30] sm:$0xff] %v2291_v32  ;;  %v2292_v42 = vmul.f32 %v2276_v56, %v3256_v50  ;;  %v2702_v46 = vpop.eup %2701  ;;  %v2280_v4 = vmul.f32 %v2700_v40, %v2512_v62  ;;  %v2511_v50 = vadd.f32 -1.0, %v2233_v18 }
 0x1e2   : > { %2303 = vst.msk [vmem:[%s3280_s7 + $0x28] sm:$0xff] %vm2299_vm10, %v2290_v0  ;;  %v2287_v57 = vmul.f32 %v2266_v17, %v3260_v43  ;;  %v2284_v27 = vmul.f32 %v2702_v46, %v2514_v36  ;;  %v2704_v54 = vpop.eup %2703 }
 0x1e3   : > { %2305 = vst [vmem:[%s3280_s7 + $0x38] sm:$0xff] %v2292_v42  ;;  %v2294_v58 = vmul.f32 %v2280_v4, %v3263_v47  ;;  %v2282_v3 = vmul.f32 %v2704_v54, %v2513_v2 }
 0x1e4   : > { %2300 = vst.msk [vmem:[%s3280_s7 + $0x10] sm:$0xff] %vm2299_vm10, %v2287_v57  ;;  %v2296_v61 = vmul.f32 %v2284_v27, %v3266_v9 }
 0x1e5   : > { %v2706_v60 = vpop.eup %2705  ;;  %2307 = vst [vmem:[%s3280_s7 + $0x48] sm:$0xff] %v2294_v58  ;;  %v2295_v43 = vmul.f32 %v2282_v3, %v3269_v11 }
 0x1e6   : > { %v2278_v5 = vmul.f32 %v2706_v60, %v2511_v50  ;;  %2309 = vst.msk [vmem:[%s3280_s7 + $0x58] sm:$0xff] %vm2299_vm10, %v2296_v61 }
 0x1e7   : > { %2308 = vst [vmem:[%s3280_s7 + $0x50] sm:$0xff] %v2295_v43 }
 0x1e8   : > { %v2293_v53 = vmul.f32 %v2278_v5, %v3273_v20 }
 0x1ea   : > { %2306 = vst.msk [vmem:[%s3280_s7 + $0x40] sm:$0xff] %vm2299_vm10, %v2293_v53 }
 0x1eb PF: > { %s13_s12 = sadd.s32 1, %s2713_s12  }
 0x1ec   : > { %p10_p4 = scmp.ge.s32.totalorder %s13_s12, 4  }
 0x1ee   :  { %12 = sbr.rel (!%p10_p4) target bundleno = 1 (0x1), region = 70 }

</bundles_post_ra>
